<compile_context>
chip_gen: v6e
topology: v6e:2x2x1
jax: 0.10.0
libtpu: 0.0.40
codegen_flags: <defaults>
</compile_context>

<pallas_src>
import functools

import jax
import jax.numpy as jnp
from jax.experimental import pallas as pl
from jax.experimental.pallas import tpu as pltpu

BN_EPS = 1e-5


def _round_up(v, m):
    return ((v + m - 1) // m) * m


def _vmem_plan(c, itemsize):
    """Generation-aware VMEM plan: (scoped limit to request, tile byte budget)."""
    try:
        phys = int(pltpu.get_tpu_info().vmem_capacity_bytes)
    except Exception:
        phys = 64 * 1024 * 1024                      # v7x-safe fallback
    limit = min((phys * 3) // 4, 96 * 1024 * 1024)   # ~48 MiB on v7x, 96 MiB on v5e/v6e
    # Constant operands: (C, C) weight is double-buffered by the default
    # pipeline, plus bias / shift columns; leave the rest of the headroom for
    # compiler-internal scratch.
    const_bytes = 2 * c * c * itemsize + 4 * c * 4
    tile_budget = max(1 << 20, (limit * 7) // 10 - const_bytes)
    return limit, tile_budget


def _choose_tile_s(s, c, itemsize, n, tile_budget):
    """Pick the spatial tile width (lanes).

    Preference order:
      1. exact tiling with a multiple-of-128 divisor of S (no pad, no mask),
         unless that divisor is far below what the VMEM budget allows;
      2. a single whole-row block (block dim == full array dim is always legal);
      3. ragged cdiv tiling with the last tile masked in-kernel.
    """
    # VMEM bytes per spatial column that scale with TILE_S in the heavier sweep
    # (sweep 2): double-buffered x tile + double-buffered out tile in the I/O
    # dtype, plus ~2 f32 temporaries (conv output / gate).
    bytes_per_col = c * (4 * itemsize + 2 * 4)
    max_cols = max(128, (tile_budget // bytes_per_col) // 128 * 128)
    if n == 1 and s >= 256:
        # Keep >= 2 spatial tiles so v7x's two TensorCores both get work.
        max_cols = max(128, min(max_cols, _round_up(pl.cdiv(s, 2), 128)))
    max_cols = min(max_cols, _round_up(s, 128))

    if s % 128 == 0:
        best = 128
        for t in range(max_cols, 127, -128):
            if s % t == 0:
                best = t
                break
        # A divisor much smaller than the budget allows would shrink per-step
        # DMAs and let per-step grid overhead dominate; prefer ragged instead.
        if 4 * best >= max_cols:
            return best
    if s <= max_cols:
        return s            # single full-row block (legal even if s % 128 != 0)
    return max_cols         # ragged last tile, masked in-kernel for the stats


def _stats_kernel(x_ref, w_ref, b_ref, sum_ref, m2_ref, *, tile_s, s_valid,
                  need_mask):
    """Per-tile 1x1 conv + per-channel centered partial statistics."""
    x = x_ref[...]                                                    # (C, TILE_S)
    y = jnp.dot(w_ref[...], x, preferred_element_type=jnp.float32)   # MXU, f32 acc
    y = y + b_ref[...]
    if need_mask:
        # Ragged last tile: columns past S hold undefined data (out-of-bounds
        # block reads), so exclude them from the statistics exactly.
        start = pl.program_id(1) * tile_s
        col = jax.lax.broadcasted_iota(jnp.int32, (1, tile_s), 1) + start
        valid = col < s_valid
        cnt = jnp.minimum(jnp.int32(tile_s),
                          jnp.int32(s_valid) - start).astype(jnp.float32)
        y = jnp.where(valid, y, 0.0)
        tsum = jnp.sum(y, axis=1, keepdims=True)
        d = jnp.where(valid, y - tsum / cnt, 0.0)
    else:
        tsum = jnp.sum(y, axis=1, keepdims=True)
        d = y - tsum * (1.0 / tile_s)
    sum_ref[...] = tsum
    m2_ref[...] = jnp.sum(d * d, axis=1, keepdims=True)


def _apply_kernel(x_ref, ws_ref, shift_ref, o_ref):
    """Recompute the conv with the BN-folded weight, add shift, ReLU, gate."""
    x = x_ref[...]
    z = jnp.dot(ws_ref[...], x, preferred_element_type=jnp.float32) + shift_ref[...]
    z = jnp.maximum(z, 0.0)                                           # BN + ReLU (f32)
    o_ref[...] = (x.astype(jnp.float32) * z).astype(o_ref.dtype)      # gate, lane-dense


def wsp_block(x_nchw, w, b, gamma, beta):
    """Forward pass of WSPBlock.

    x_nchw: (N, C, H, W), f32 or bf16 (bf16 halves HBM traffic; math stays f32).
    w:      (C_out, C_in) 1x1-conv weight, i.e. torch_weight[:, :, 0, 0].
    b:      (C,) conv bias.
    gamma:  (C,) BatchNorm weight.   beta: (C,) BatchNorm bias.
    returns (N, C, H, W) in x's dtype.
    """
    n, c, h, wd = x_nchw.shape
    s = h * wd
    x3 = x_nchw.reshape(n, c, s)                   # free: NCHW is channel-major
    itemsize = x3.dtype.itemsize

    vmem_limit, tile_budget = _vmem_plan(c, itemsize)
    tile_s = _choose_tile_s(s, c, itemsize, n, tile_budget)
    s_tiles = pl.cdiv(s, tile_s)
    need_mask = (s % tile_s) != 0

    w_k = w.astype(x3.dtype)                       # MXU operands follow I/O dtype
    b_col = b.astype(jnp.float32).reshape(c, 1)

    params = pltpu.CompilerParams(
        dimension_semantics=("parallel", "parallel"),
        vmem_limit_bytes=vmem_limit,
    )

    # ---- sweep 1: per-tile conv + per-channel centered partial stats ----------
    stats_cost = pl.CostEstimate(
        flops=2 * n * s * c * c + 6 * n * s * c,
        transcendentals=0,
        bytes_accessed=(n * c * s * itemsize + c * c * itemsize + c * 4
                        + 2 * n * s_tiles * c * 4),
    )
    sums4, m2s4 = pl.pallas_call(
        functools.partial(_stats_kernel, tile_s=tile_s, s_valid=s,
                          need_mask=need_mask),
        grid=(n, s_tiles),
        in_specs=[
            pl.BlockSpec((None, c, tile_s), lambda i, j: (i, 0, j)),   # x tile
            pl.BlockSpec((c, c), lambda i, j: (0, 0)),                 # weight
            pl.BlockSpec((c, 1), lambda i, j: (0, 0)),                 # bias
        ],
        out_specs=[
            pl.BlockSpec((None, None, c, 1), lambda i, j: (i, j, 0, 0)),
            pl.BlockSpec((None, None, c, 1), lambda i, j: (i, j, 0, 0)),
        ],
        out_shape=[
            jax.ShapeDtypeStruct((n, s_tiles, c, 1), jnp.float32),
            jax.ShapeDtypeStruct((n, s_tiles, c, 1), jnp.float32),
        ],
        compiler_params=params,
        cost_estimate=stats_cost,
    )(x3, w_k, b_col)

    # ---- tiny JAX glue: Chan combine -> mean/var -> fold into weight/shift ----
    sums = sums4[..., 0]                               # (n, s_tiles, c)
    m2s = m2s4[..., 0]
    counts = jnp.full((s_tiles,), float(tile_s), dtype=jnp.float32)
    if need_mask:
        counts = counts.at[-1].set(float(s - (s_tiles - 1) * tile_s))
    total = jnp.float32(n * s)
    mean = jnp.sum(sums, axis=(0, 1)) / total          # (c,)
    tile_mean = sums / counts[None, :, None]
    m2 = (jnp.sum(m2s, axis=(0, 1))
          + jnp.sum(counts[None, :, None] * (tile_mean - mean) ** 2, axis=(0, 1)))
    var = m2 / total                                   # biased var (PyTorch fwd)
    rstd = jax.lax.rsqrt(var + BN_EPS)
    scale = gamma.astype(jnp.float32) * rstd
    shift = beta.astype(jnp.float32) + (b.astype(jnp.float32) - mean) * scale
    w_fold = (scale[:, None] * w.astype(jnp.float32)).astype(x3.dtype)
    shift_col = shift.reshape(c, 1)

    # ---- sweep 2: recompute conv (folded weight), shift, ReLU, gate -----------
    apply_cost = pl.CostEstimate(
        flops=2 * n * s * c * c + 4 * n * s * c,
        transcendentals=0,
        bytes_accessed=2 * n * c * s * itemsize + c * c * itemsize + c * 4,
    )
    out3 = pl.pallas_call(
        _apply_kernel,
        grid=(n, s_tiles),
        in_specs=[
            pl.BlockSpec((None, c, tile_s), lambda i, j: (i, 0, j)),   # x tile
            pl.BlockSpec((c, c), lambda i, j: (0, 0)),                 # folded weight
            pl.BlockSpec((c, 1), lambda i, j: (0, 0)),                 # shift
        ],
        out_specs=pl.BlockSpec((None, c, tile_s), lambda i, j: (i, 0, j)),
        out_shape=jax.ShapeDtypeStruct((n, c, s), x3.dtype),
        compiler_params=params,
        cost_estimate=apply_cost,
    )(x3, w_fold, shift_col)

    return out3.reshape(n, c, h, wd)
    # TODO(synk): BatchNorm2d running_mean/running_var buffer updates (training
    # bookkeeping, not part of the returned tensor) are not emitted; note that
    # PyTorch uses the *unbiased* variance for running_var.


def _reference(x, w, b, gamma, beta):
    """Pure-JAX reference mirroring the PyTorch forward (training-mode BN)."""
    xf = x.astype(jnp.float32)
    y = jnp.einsum("oc,nchw->nohw", w.astype(jnp.float32), xf,
                   precision=jax.lax.Precision.HIGHEST) + b[None, :, None, None]
    mean = jnp.mean(y, axis=(0, 2, 3), keepdims=True)
    var = jnp.mean((y - mean) ** 2, axis=(0, 2, 3), keepdims=True)
    z = (gamma[None, :, None, None] * (y - mean) * jax.lax.rsqrt(var + BN_EPS)
         + beta[None, :, None, None])
    return xf * jnp.maximum(z, 0.0)


if __name__ == "__main__":
    key = jax.random.PRNGKey(0)
    k_x, k_w, k_b = jax.random.split(key, 3)

    N, C, H, W = 2, 4, 16, 16
    x = jax.random.normal(k_x, (N, C, H, W), dtype=jnp.float32)

    # Shapes from nn.Conv2d(C, C, 1) + nn.BatchNorm2d(C); deterministic init.
    w_conv = jax.random.normal(k_w, (C, C), dtype=jnp.float32) * (1.0 / jnp.sqrt(C))
    b_conv = jax.random.normal(k_b, (C,), dtype=jnp.float32) * 0.1
    gamma = jnp.ones((C,), dtype=jnp.float32)    # BN default init
    beta = jnp.zeros((C,), dtype=jnp.float32)    # BN default init

    fwd = jax.jit(wsp_block)

    out = jax.block_until_ready(fwd(x, w_conv, b_conv, gamma, beta))
    ref = _reference(x, w_conv, b_conv, gamma, beta)
    assert out.shape == (N, C, H, W)
    assert out.dtype == x.dtype
    assert jnp.allclose(out, ref, atol=1e-4, rtol=1e-4), "f32 mismatch vs reference"

    # bf16 I/O path (halves HBM bytes; stats/normalization still f32 inside).
    out_bf16 = jax.block_until_ready(
        fwd(x.astype(jnp.bfloat16), w_conv, b_conv, gamma, beta))
    assert out_bf16.dtype == jnp.bfloat16
    assert jnp.allclose(out_bf16.astype(jnp.float32), ref, atol=1e-1, rtol=1e-1), \
        "bf16 mismatch vs reference"

    print("KERNEL_OK")
</pallas_src>

<mosaic_0001>
module attributes {stable_mosaic.version = 11 : i64} {
  func.func @_stats_kernel(%arg0: i32, %arg1: i32, %arg2: memref<1x4x256xf32, #tpu.memory_space<vmem>>, %arg3: memref<4x4xf32, #tpu.memory_space<vmem>>, %arg4: memref<4x1xf32, #tpu.memory_space<vmem>>, %arg5: memref<1x1x4x1xf32, #tpu.memory_space<vmem>>, %arg6: memref<1x1x4x1xf32, #tpu.memory_space<vmem>>) attributes {dimension_semantics = [#tpu.dimension_semantics<parallel>, #tpu.dimension_semantics<parallel>], iteration_bounds = array<i64: 2, 1>, scalar_prefetch = 0 : i64, scratch_operands = 0 : i64, tpu.core_type = #tpu.core_type<tc>, window_params = [{transform_indices = @transform_0, window_bounds = array<i64: 1, 4, 256>}, {pipeline_mode = #tpu.pipeline_mode<synchronous>, transform_indices = @transform_1, window_bounds = array<i64: 4, 4>}, {pipeline_mode = #tpu.pipeline_mode<synchronous>, transform_indices = @transform_2, window_bounds = array<i64: 4, 1>}, {transform_indices = @transform_3, window_bounds = array<i64: 1, 1, 4, 1>}, {transform_indices = @transform_4, window_bounds = array<i64: 1, 1, 4, 1>}]} {
    %c0 = arith.constant 0 : index
    %c0_0 = arith.constant 0 : index
    %c0_1 = arith.constant 0 : index
    %0 = vector.load %arg2[%c0, %c0_0, %c0_1] : memref<1x4x256xf32, #tpu.memory_space<vmem>>, vector<1x4x256xf32>
    %1 = vector.shape_cast %0 : vector<1x4x256xf32> to vector<4x256xf32>
    %c0_2 = arith.constant 0 : index
    %c0_3 = arith.constant 0 : index
    %2 = vector.load %arg3[%c0_2, %c0_3] : memref<4x4xf32, #tpu.memory_space<vmem>>, vector<4x4xf32>
    %cst = arith.constant dense<0.000000e+00> : vector<4x256xf32>
    %3 = tpu.matmul %2, %1, %cst {dimension_numbers = #tpu.dot_dimension_numbers<[1], [0], [0], [1], [0, 0, 1, 1], [], []>} : vector<4x4xf32>, vector<4x256xf32>, vector<4x256xf32> -> vector<4x256xf32>
    %c0_4 = arith.constant 0 : index
    %c0_5 = arith.constant 0 : index
    %4 = vector.load %arg4[%c0_4, %c0_5] : memref<4x1xf32, #tpu.memory_space<vmem>>, vector<4x1xf32>
    %5 = vector.broadcast %4 : vector<4x1xf32> to vector<4x256xf32>
    %6 = arith.addf %3, %5 : vector<4x256xf32>
    %cst_6 = arith.constant dense<0.000000e+00> : vector<4xf32>
    %7 = vector.multi_reduction <add>, %6, %cst_6 [1] : vector<4x256xf32> to vector<4xf32>
    %8 = vector.shape_cast %7 : vector<4xf32> to vector<4x1xf32>
    %cst_7 = arith.constant 3.906250e-03 : f32
    %9 = vector.broadcast %cst_7 : f32 to vector<4x1xf32>
    %10 = arith.mulf %8, %9 : vector<4x1xf32>
    %11 = vector.broadcast %10 : vector<4x1xf32> to vector<4x256xf32>
    %12 = arith.subf %6, %11 : vector<4x256xf32>
    %c0_8 = arith.constant 0 : index
    %c0_9 = arith.constant 0 : index
    %c0_10 = arith.constant 0 : index
    %c0_11 = arith.constant 0 : index
    %13 = vector.load %arg5[%c0_8, %c0_9, %c0_10, %c0_11] : memref<1x1x4x1xf32, #tpu.memory_space<vmem>>, vector<1x1x4x1xf32>
    %14 = vector.shape_cast %13 : vector<1x1x4x1xf32> to vector<4x1xf32>
    %15 = vector.shape_cast %8 : vector<4x1xf32> to vector<1x1x4x1xf32>
    tpu.vector_store %arg5[%c0_8, %c0_9, %c0_10, %c0_11], %15 {strides = array<i32>} : memref<1x1x4x1xf32, #tpu.memory_space<vmem>>, vector<1x1x4x1xf32>,
    %16 = arith.mulf %12, %12 : vector<4x256xf32>
    %cst_12 = arith.constant dense<0.000000e+00> : vector<4xf32>
    %17 = vector.multi_reduction <add>, %16, %cst_12 [1] : vector<4x256xf32> to vector<4xf32>
    %18 = vector.shape_cast %17 : vector<4xf32> to vector<4x1xf32>
    %c0_13 = arith.constant 0 : index
    %c0_14 = arith.constant 0 : index
    %c0_15 = arith.constant 0 : index
    %c0_16 = arith.constant 0 : index
    %19 = vector.load %arg6[%c0_13, %c0_14, %c0_15, %c0_16] : memref<1x1x4x1xf32, #tpu.memory_space<vmem>>, vector<1x1x4x1xf32>
    %20 = vector.shape_cast %19 : vector<1x1x4x1xf32> to vector<4x1xf32>
    %21 = vector.shape_cast %18 : vector<4x1xf32> to vector<1x1x4x1xf32>
    tpu.vector_store %arg6[%c0_13, %c0_14, %c0_15, %c0_16], %21 {strides = array<i32>} : memref<1x1x4x1xf32, #tpu.memory_space<vmem>>, vector<1x1x4x1xf32>,
    return
  }
  func.func @transform_0(%arg0: i32, %arg1: i32) -> (i32, i32, i32) {
    %c0_i32 = arith.constant 0 : i32
    %c0_i32_0 = arith.constant 0 : i32
    return %arg0, %c0_i32, %arg1 : i32, i32, i32
  }
  func.func @transform_1(%arg0: i32, %arg1: i32) -> (i32, i32) {
    %c0_i32 = arith.constant 0 : i32
    %c0_i32_0 = arith.constant 0 : i32
    %c0_i32_1 = arith.constant 0 : i32
    return %c0_i32, %c0_i32_0 : i32, i32
  }
  func.func @transform_2(%arg0: i32, %arg1: i32) -> (i32, i32) {
    %c0_i32 = arith.constant 0 : i32
    %c0_i32_0 = arith.constant 0 : i32
    %c0_i32_1 = arith.constant 0 : i32
    return %c0_i32, %c0_i32_0 : i32, i32
  }
  func.func @transform_3(%arg0: i32, %arg1: i32) -> (i32, i32, i32, i32) {
    %c0_i32 = arith.constant 0 : i32
    %c0_i32_0 = arith.constant 0 : i32
    %c0_i32_1 = arith.constant 0 : i32
    return %arg0, %arg1, %c0_i32, %c0_i32_0 : i32, i32, i32, i32
  }
  func.func @transform_4(%arg0: i32, %arg1: i32) -> (i32, i32, i32, i32) {
    %c0_i32 = arith.constant 0 : i32
    %c0_i32_0 = arith.constant 0 : i32
    %c0_i32_1 = arith.constant 0 : i32
    return %arg0, %arg1, %c0_i32, %c0_i32_0 : i32, i32, i32, i32
  }
}

module attributes {stable_mosaic.version = 11 : i64} {
  func.func @_apply_kernel(%arg0: i32, %arg1: i32, %arg2: memref<1x4x256xf32, #tpu.memory_space<vmem>>, %arg3: memref<4x4xf32, #tpu.memory_space<vmem>>, %arg4: memref<4x1xf32, #tpu.memory_space<vmem>>, %arg5: memref<1x4x256xf32, #tpu.memory_space<vmem>>) attributes {dimension_semantics = [#tpu.dimension_semantics<parallel>, #tpu.dimension_semantics<parallel>], iteration_bounds = array<i64: 2, 1>, scalar_prefetch = 0 : i64, scratch_operands = 0 : i64, tpu.core_type = #tpu.core_type<tc>, window_params = [{transform_indices = @transform_0, window_bounds = array<i64: 1, 4, 256>}, {pipeline_mode = #tpu.pipeline_mode<synchronous>, transform_indices = @transform_1, window_bounds = array<i64: 4, 4>}, {pipeline_mode = #tpu.pipeline_mode<synchronous>, transform_indices = @transform_2, window_bounds = array<i64: 4, 1>}, {transform_indices = @transform_3, window_bounds = array<i64: 1, 4, 256>}]} {
    %c0 = arith.constant 0 : index
    %c0_0 = arith.constant 0 : index
    %c0_1 = arith.constant 0 : index
    %0 = vector.load %arg2[%c0, %c0_0, %c0_1] : memref<1x4x256xf32, #tpu.memory_space<vmem>>, vector<1x4x256xf32>
    %1 = vector.shape_cast %0 : vector<1x4x256xf32> to vector<4x256xf32>
    %c0_2 = arith.constant 0 : index
    %c0_3 = arith.constant 0 : index
    %2 = vector.load %arg3[%c0_2, %c0_3] : memref<4x4xf32, #tpu.memory_space<vmem>>, vector<4x4xf32>
    %cst = arith.constant dense<0.000000e+00> : vector<4x256xf32>
    %3 = tpu.matmul %2, %1, %cst {dimension_numbers = #tpu.dot_dimension_numbers<[1], [0], [0], [1], [0, 0, 1, 1], [], []>} : vector<4x4xf32>, vector<4x256xf32>, vector<4x256xf32> -> vector<4x256xf32>
    %c0_4 = arith.constant 0 : index
    %c0_5 = arith.constant 0 : index
    %4 = vector.load %arg4[%c0_4, %c0_5] : memref<4x1xf32, #tpu.memory_space<vmem>>, vector<4x1xf32>
    %5 = vector.broadcast %4 : vector<4x1xf32> to vector<4x256xf32>
    %6 = arith.addf %3, %5 : vector<4x256xf32>
    %cst_6 = arith.constant 0.000000e+00 : f32
    %7 = vector.broadcast %cst_6 : f32 to vector<4x256xf32>
    %8 = arith.maximumf %6, %7 : vector<4x256xf32>
    %9 = arith.mulf %1, %8 : vector<4x256xf32>
    %c0_7 = arith.constant 0 : index
    %c0_8 = arith.constant 0 : index
    %c0_9 = arith.constant 0 : index
    %10 = vector.load %arg5[%c0_7, %c0_8, %c0_9] : memref<1x4x256xf32, #tpu.memory_space<vmem>>, vector<1x4x256xf32>
    %11 = vector.shape_cast %10 : vector<1x4x256xf32> to vector<4x256xf32>
    %12 = vector.shape_cast %9 : vector<4x256xf32> to vector<1x4x256xf32>
    tpu.vector_store %arg5[%c0_7, %c0_8, %c0_9], %12 {strides = array<i32>} : memref<1x4x256xf32, #tpu.memory_space<vmem>>, vector<1x4x256xf32>,
    return
  }
  func.func @transform_0(%arg0: i32, %arg1: i32) -> (i32, i32, i32) {
    %c0_i32 = arith.constant 0 : i32
    %c0_i32_0 = arith.constant 0 : i32
    return %arg0, %c0_i32, %arg1 : i32, i32, i32
  }
  func.func @transform_1(%arg0: i32, %arg1: i32) -> (i32, i32) {
    %c0_i32 = arith.constant 0 : i32
    %c0_i32_0 = arith.constant 0 : i32
    %c0_i32_1 = arith.constant 0 : i32
    return %c0_i32, %c0_i32_0 : i32, i32
  }
  func.func @transform_2(%arg0: i32, %arg1: i32) -> (i32, i32) {
    %c0_i32 = arith.constant 0 : i32
    %c0_i32_0 = arith.constant 0 : i32
    %c0_i32_1 = arith.constant 0 : i32
    return %c0_i32, %c0_i32_0 : i32, i32
  }
  func.func @transform_3(%arg0: i32, %arg1: i32) -> (i32, i32, i32) {
    %c0_i32 = arith.constant 0 : i32
    %c0_i32_0 = arith.constant 0 : i32
    return %arg0, %c0_i32, %arg1 : i32, i32, i32
  }
}

</mosaic_0001>

<bundles_post_ra>
// kernel: wsp_block.2
= control target key start
LH: loop header
LB: loop body
LE: loop exit
PB: predicated region body
PF: predicated region fallthrough
CT: control target
= control target key end

     0   :  { %s571_s15 = smov 0   ;;  %s573_s16 = smov 0   ;;  %s623_s0 = inlined_call_operand.vmem [shape: f32[2,4,256], index: 0, kind: input, shape index: {}]   ;;  %s624_s1 = inlined_call_operand.vmem [shape: f32[4,4], index: 1, kind: input, shape index: {}]   ;;  %s625_s2 = inlined_call_operand.vmem [shape: f32[4,1], index: 2, kind: input, shape index: {}]   ;;  %s626_s3 = inlined_call_operand.vmem [shape: f32[2,1,4,1], index: 3, kind: output, shape index: {0}]   ;;  %s627_s4 = inlined_call_operand.vmem [shape: f32[2,1,4,1], index: 4, kind: output, shape index: {1}]  }
   0x1   :  { %s575_s17 = smov 0  }
   0x2 LB: > { %s27_s18 = sadd.s32 1, %s538_s16  ;;  %p481_p0 = scmp.ge.s32.totalorder %s542_s17, 1  ;;  %s542_s17 = sphi %s575_s17, %s15_s17   ;;  %s538_s16 = sphi %s573_s16, %s629_s16   ;;  %s534_s15 = sphi %s571_s15, %s628_s15  }
   0x3   : > { %p29_p1 = scmp.ge.s32.totalorder %s27_s18, 2  ;;  %p188_p2 = scmp.lt.s32.totalorder %s542_s17, 3 }
   0x5   : > { %s631_s18 = smov (%p29_p1, %s27_s18), 0  ;;  %p189_p3 = pnand %p481_p0, %p188_p2 }
   0x6   : > { %p228_p4 = scmp.lt.s32.totalorder (!%p189_p3), %s534_s15, 1 }
   0x7   : > { %192 = sbr.rel (%p189_p3) target bundleno = 506 (0x1fa), region = 32 }
   0xc   : > { %v544_v0 = vmov 0.0   ;;  %v253_v1 = vld [vmem:[%s625_s2] sm:$0xf]  ;;  %s633_s15 = smov (!%p228_p4, %s534_s15), 1  ;;  %v545_v2 = vmov 0   ;;  %vm265_vm0 = vcmask 1043456  }
   0xd   : > { %334 = vmatprep.mubr.f32.mxu0 %v544_v0  ;;  %518 = vset.pattern.permute.xlu0 %v545_v2  ;;  %s491_s21 = sshll.u32 %s633_s15, 3  ;;  %v252_v5 = vld [vmem:[%s624_s1] sm:$0xf]  ;;  %vm261_vm1 = vcmask 31744   ;;  %s484_s27 = sshll.u32 %s633_s15, 2  ;;  %vm349_vm2 = vcmask 3072  }
   0xe   : > { %256 = vperm.xlu0 %518, %v253_v1   ;;  %s235_s24 = scalar_lea.vmem %s623_s0, %s491_s21  ;;  %s243_s30 = scalar_lea.vmem %s626_s3, %s484_s27 }
   0xf   : > { %v251_v3 = vld [vmem:[%s235_s24] sm:$0xff]  ;;  %s250_s7 = scalar_lea.vmem %s627_s4, %s484_s27 }
  0x10   : > { %v260_v4 = vcombine.high %v251_v3, %v251_v3 }
  0x12   : > { %486 = vmatprep.subr.msk.mxu0 %vm265_vm0, %v260_v4 }
  0x13   : > { %487 = vmatpush1.msk.msra.mxu0 %vm265_vm0, %v251_v3 }
  0x14   : > { %488 = vmatmul.mubr.msk.f32.vlgmr.msra.gmra.mxu0 %vm261_vm1, %v252_v5 }
  0x89   : > { %v257_v6 = vpop.permute.xlu0 %256 }
  0xd4   : > { %v336_v7 = vpop.f32.mrf.mxu0 }
  0xd5   : > { %v337_v8 = vadd.f32 %v336_v7, %v257_v6 }
  0xd6   : > { %v338_v9 = vpop.f32.mrf.mxu0 }
  0xd7   : > { %v339_v10 = vadd.f32 %v338_v9, %v257_v6  ;;  %v341_v11 = vsel %vm265_vm0, %v337_v8, 0.0 }
  0xd9   : > { %v342_v12 = vsel %vm265_vm0, %v339_v10, 0.0 }
  0xda   : > { %v343_v13 = vadd.f32 %v342_v12, %v341_v11 }
  0xdc   : > { %344 = vadd.xlane.f32.xlu0 %v343_v13 }
 0x165   : > { %v345_v14 = vpop.xlane.xlu0 %344 }
 0x166   : > { %v346_v15 = vmul.f32 0.00390625, %v345_v14  ;;  %350 = vst.msk [vmem:[%s243_s30] sm:$0xf] %vm349_vm2, %v345_v14 }
 0x168   : > { %v347_v16 = vsub.f32 %v337_v8, %v346_v15  ;;  %v348_v17 = vsub.f32 %v339_v10, %v346_v15 }
 0x16a   : > { %v351_v18 = vmul.f32 %v347_v16, %v347_v16  ;;  %v352_v19 = vmul.f32 %v348_v17, %v348_v17 }
 0x16c   : > { %v353_v20 = vsel %vm265_vm0, %v351_v18, 0.0  ;;  %v354_v21 = vsel %vm265_vm0, %v352_v19, 0.0 }
 0x16d   : > { %v355_v22 = vadd.f32 %v354_v21, %v353_v20 }
 0x16f   : > { %356 = vadd.xlane.f32.xlu1 %v355_v22 }
 0x1f8   : > { %v357_v23 = vpop.xlane.xlu1 %356 }
 0x1f9   : > { %358 = vst.msk [vmem:[%s250_s7] sm:$0xf] %vm349_vm2, %v357_v23 }
 0x1fa PF: > { %s15_s17 = sadd.s32 1, %s542_s17   ;;  %s628_s15 = smov %s538_s16 }
 0x1fb   : > { %p12_p5 = scmp.ge.s32.totalorder %s15_s17, 4   ;;  %s629_s16 = smov %s631_s18 }
 0x1fd   :  { %14 = sbr.rel (!%p12_p5) target bundleno = 2 (0x2), region = 74 }

// kernel: wsp_block.3
= control target key start
LH: loop header
LB: loop body
LE: loop exit
PB: predicated region body
PF: predicated region fallthrough
CT: control target
= control target key end

     0   :  { %s485_s12 = smov 0   ;;  %s487_s13 = smov 0   ;;  %s524_s0 = inlined_call_operand.vmem [shape: f32[2,4,256], index: 0, kind: input, shape index: {}]   ;;  %s525_s1 = inlined_call_operand.vmem [shape: f32[4,4], index: 1, kind: input, shape index: {}]   ;;  %s526_s2 = inlined_call_operand.vmem [shape: f32[4,1], index: 2, kind: input, shape index: {}]   ;;  %s527_s3 = inlined_call_operand.vmem [shape: f32[2,4,256], index: 3, kind: output, shape index: {}]  }
   0x1   :  { %s489_s14 = smov 0  }
   0x2 LB: > { %s25_s15 = sadd.s32 1, %s457_s13  ;;  %p399_p0 = scmp.ge.s32.totalorder %s461_s14, 1  ;;  %s461_s14 = sphi %s489_s14, %s13_s14   ;;  %s457_s13 = sphi %s487_s13, %s529_s13   ;;  %s453_s12 = sphi %s485_s12, %s528_s12  }
   0x3   : > { %p27_p1 = scmp.ge.s32.totalorder %s25_s15, 2  ;;  %p158_p2 = scmp.lt.s32.totalorder %s461_s14, 3 }
   0x5   : > { %s531_s15 = smov (%p27_p1, %s25_s15), 0  ;;  %p159_p3 = pnand %p399_p0, %p158_p2 }
   0x6   : > { %p191_p4 = scmp.lt.s32.totalorder (!%p159_p3), %s453_s12, 1 }
   0x7   : > { %162 = sbr.rel (%p159_p3) target bundleno = 224 (0xe0), region = 32 }
   0xc   : > { %v463_v0 = vmov 0.0   ;;  %v212_v1 = vld [vmem:[%s526_s2] sm:$0xf]  ;;  %s533_s12 = smov (!%p191_p4, %s453_s12), 1  ;;  %v464_v2 = vmov 0   ;;  %vm224_vm0 = vcmask 1043456  }
   0xd   : > { %293 = vmatprep.mubr.f32.mxu0 %v463_v0  ;;  %437 = vset.pattern.permute.xlu0 %v464_v2  ;;  %s409_s18 = sshll.u32 %s533_s12, 3  ;;  %v211_v5 = vld [vmem:[%s525_s1] sm:$0xf]  ;;  %vm220_vm1 = vcmask 31744  }
   0xe   : > { %215 = vperm.xlu0 %437, %v212_v1   ;;  %s198_s21 = scalar_lea.vmem %s524_s0, %s409_s18  ;;  %s208_s26 = scalar_lea.vmem %s527_s3, %s409_s18 }
   0xf   : > { %v210_v3 = vld [vmem:[%s198_s21] sm:$0xff] }
  0x10   : > { %v219_v4 = vcombine.high %v210_v3, %v210_v3 }
  0x12   : > { %404 = vmatprep.subr.msk.mxu0 %vm224_vm0, %v219_v4 }
  0x13   : > { %405 = vmatpush1.msk.msra.mxu0 %vm224_vm0, %v210_v3 }
  0x14   : > { %406 = vmatmul.mubr.msk.f32.vlgmr.msra.gmra.mxu0 %vm220_vm1, %v211_v5 }
  0x89   : > { %v216_v6 = vpop.permute.xlu0 %215 }
  0xd4   : > { %v295_v7 = vpop.f32.mrf.mxu0 }
  0xd5   : > { %v296_v8 = vadd.f32 %v295_v7, %v216_v6 }
  0xd6   : > { %v297_v9 = vpop.f32.mrf.mxu0 }
  0xd7   : > { %v298_v10 = vadd.f32 %v297_v9, %v216_v6  ;;  %v300_v11 = vmax.f32 %v296_v8, 0.0 }
  0xd9   : > { %v301_v12 = vmax.f32 %v298_v10, 0.0 }
  0xdb   : > { %v304_v13 = vcombine.low %v300_v11, %v301_v12 }
  0xdd   : > { %v306_v14 = vmul.f32 %v304_v13, %v210_v3 }
  0xdf   : > { %307 = vst [vmem:[%s208_s26] sm:$0xff] %v306_v14 }
  0xe0 PF: > { %s13_s14 = sadd.s32 1, %s461_s14   ;;  %s528_s12 = smov %s457_s13 }
  0xe1   : > { %p10_p5 = scmp.ge.s32.totalorder %s13_s14, 4   ;;  %s529_s13 = smov %s531_s15 }
  0xe3   :  { %12 = sbr.rel (!%p10_p5) target bundleno = 2 (0x2), region = 62 }

</bundles_post_ra>
